<compile_context>
chip_gen: v7x
topology: tpu7x:2x2x1
jax: 0.10.0
libtpu: 0.0.40
codegen_flags: <defaults>
</compile_context>

<pallas_src>
import numpy as np
import jax
import jax.numpy as jnp
from jax.experimental import pallas as pl
from jax.experimental.pallas import tpu as pltpu


def _tpa_fused_kernel(q_ref, x_ref, wdt_ref, bdt_ref, cm_ref, sel_ref, selt_ref,
                      out_ref):
    # Shapes (SF = S*F, LS = L*S):
    #   q_ref    (TB, S)    query block
    #   x_ref    (TB, LS)   attn_states flattened row-major:  x[b, l*S + s]
    #   wdt_ref  (S, SF)    dense weight lane-tiled:  wd[s, i % F]
    #   bdt_ref  (1, SF)    dense bias  lane-tiled:   bd[i % F]
    #   cm_ref   (LS, SF)   conv matrix: wc[i // S, l] * (i % S == s) at row l*S+s
    #   sel_ref  (SF, S)    0/1 chunk-sum matrix:     sel[i, s] = (i // F == s)
    #   selt_ref (S, SF)    transpose of sel (chunk broadcast)
    #   out_ref  (TB, SF)   lane-dense flat output, reshaped to (B, S, F) outside

    # w[b, f] broadcast to the flat lane layout: w_tiled[b, i] == w[b, i % F]
    w_tiled = jnp.dot(q_ref[...], wdt_ref[...],
                      preferred_element_type=jnp.float32) + bdt_ref[...]

    # Flattened conv output in raw [F, S] order (the buffer PyTorch .view's):
    #   conv_flat[b, i] = sum_l wc[i//S, l] * x[b, l, i % S]
    conv_flat = jnp.dot(x_ref[...], cm_ref[...],
                        preferred_element_type=jnp.float32)            # (TB, SF)

    # Scores s[b, s] = sum_f conv_view[b, s, f] * w[b, f]  (chunk-sum as MXU matmul)
    prod = conv_flat * w_tiled
    scores = jnp.dot(prod, sel_ref[...],
                     preferred_element_type=jnp.float32)               # (TB, S)
    a = jax.nn.sigmoid(scores)

    # Broadcast a[b, s] back to the flat lane layout: a_exp[b, i] == a[b, i // F]
    a_exp = jnp.dot(a, selt_ref[...],
                    preferred_element_type=jnp.float32)                # (TB, SF)

    out_ref[...] = (a_exp * conv_flat).astype(out_ref.dtype)


def _pick_batch_tile(B):
    # Small B: whole batch per step (block == full array dims is always legal).
    # Large B: multiple-of-8 tiles capped at 512 so that (a) the grid has >= 2
    # steps and the "parallel" axis shards across both TensorCores on v7x, and
    # (b) the double-buffered working set stays ~4-5 MiB -- inside v5e's 16 MiB
    # default scoped VMEM and well inside v7x's 32 MiB default / 64 MiB physical.
    if B <= 512:
        return B
    return 512


def tpa_forward(query, attn_states, wd, bd, wc, *, attn_size, attn_length, filter_num):
    B = query.shape[0]
    S, L, F = attn_size, attn_length, filter_num
    SF = S * F
    LS = L * S

    # --- one-time input / constant re-layouts (plain JAX, layout plumbing only) ---
    x_flat = attn_states.reshape(B, LS)            # (B, LS)  x_flat[b, l*S + s]
    wdt = jnp.tile(wd, (1, S))                     # (S, SF)  wdt[s, i] = wd[s, i % F]
    bdt = jnp.tile(bd.reshape(1, F), (1, S))       # (1, SF)  bdt[0, i] = bd[i % F]

    # conv_mat[l*S + s, f*S + z] = wc[f, l] * (s == z)  (exact f32, VPU broadcast)
    eye_s = jnp.eye(S, dtype=jnp.float32)
    conv_mat = (jnp.transpose(wc)[:, None, :, None]
                * eye_s[None, :, None, :]).reshape(LS, SF)   # (LS, SF)

    idx = np.arange(SF)
    sel_np = (idx[:, None] // F == np.arange(S)[None, :]).astype(np.float32)  # (SF, S)
    sel = jnp.asarray(sel_np)                      # (SF, S)
    selt = jnp.asarray(sel_np.T)                   # (S, SF)

    TB = _pick_batch_tile(B)
    grid = (pl.cdiv(B, TB),)

    out_flat = pl.pallas_call(
        _tpa_fused_kernel,
        out_shape=jax.ShapeDtypeStruct((B, SF), jnp.float32),
        grid=grid,
        in_specs=[
            pl.BlockSpec((TB, S), lambda b: (b, 0)),       # query
            pl.BlockSpec((TB, LS), lambda b: (b, 0)),      # attn_states (flat)
            pl.BlockSpec((S, SF), lambda b: (0, 0)),       # wdt   (constant)
            pl.BlockSpec((1, SF), lambda b: (0, 0)),       # bdt   (constant)
            pl.BlockSpec((LS, SF), lambda b: (0, 0)),      # conv_mat (constant)
            pl.BlockSpec((SF, S), lambda b: (0, 0)),       # sel   (constant)
            pl.BlockSpec((S, SF), lambda b: (0, 0)),       # selt  (constant)
        ],
        out_specs=pl.BlockSpec((TB, SF), lambda b: (b, 0)),
        compiler_params=pltpu.CompilerParams(dimension_semantics=("parallel",)),
    )(query, x_flat, wdt, bdt, conv_mat, sel, selt)

    # Free metadata reshape: flat row-major (B, S*F) -> (B, S, F); reproduces
    # PyTorch's `.view(batch, attn_size - 1 + 1, filter_num)` exactly.
    return out_flat.reshape(B, S, F)


def tpa_reference(query, attn_states, wd, bd, wc, *, attn_size, filter_num):
    # Pure-JAX mirror of the PyTorch forward, for verification.
    B = query.shape[0]
    w = query @ wd + bd                                     # [B, F]
    conv_raw = jnp.einsum("fl,bls->bfs", wc, attn_states)   # [B, F, S]
    conv_vecs = conv_raw.reshape(B, attn_size, filter_num)  # raw .view semantics
    s = jnp.sum(conv_vecs * w[:, None, :], axis=2)          # [B, S]
    a = jax.nn.sigmoid(s)
    return a[:, :, None] * conv_vecs                        # [B, S, F]


if __name__ == "__main__":
    B = 2
    attn_size = 32      # S
    attn_length = 8     # L
    filter_num = 16     # F

    key = jax.random.PRNGKey(0)
    k_q, k_x, k_wd, k_bd, k_wc = jax.random.split(key, 5)

    query = jax.random.normal(k_q, (B, attn_size), dtype=jnp.float32)
    attn_states = jax.random.normal(k_x, (B, attn_length, attn_size), dtype=jnp.float32)

    # Deterministic parameter init (shapes from nn.Linear / nn.Conv2d in __init__).
    wd = jax.random.normal(k_wd, (attn_size, filter_num), dtype=jnp.float32) * 0.1
    bd = jax.random.normal(k_bd, (filter_num,), dtype=jnp.float32) * 0.1
    wc = jax.random.normal(k_wc, (filter_num, attn_length), dtype=jnp.float32) * 0.1
    # TODO(synk): fc1 (Linear(attn_size + filter_num, attn_size)) is declared in
    # __init__ but never used in forward(), so it is intentionally omitted.

    out = tpa_forward(query, attn_states, wd, bd, wc,
                      attn_size=attn_size, attn_length=attn_length,
                      filter_num=filter_num)
    out = jax.block_until_ready(out)

    ref = tpa_reference(query, attn_states, wd, bd, wc,
                        attn_size=attn_size, filter_num=filter_num)
    if not np.allclose(np.asarray(out), np.asarray(ref), atol=2e-5, rtol=2e-5):
        raise AssertionError("Pallas kernel output does not match reference")

    print("KERNEL_OK")
</pallas_src>

<mosaic_0001>
module attributes {stable_mosaic.version = 11 : i64} {
  func.func @_tpa_fused_kernel(%arg0: i32, %arg1: memref<2x32xf32, #tpu.memory_space<vmem>>, %arg2: memref<2x256xf32, #tpu.memory_space<vmem>>, %arg3: memref<32x512xf32, #tpu.memory_space<vmem>>, %arg4: memref<1x512xf32, #tpu.memory_space<vmem>>, %arg5: memref<256x512xf32, #tpu.memory_space<vmem>>, %arg6: memref<512x32xf32, #tpu.memory_space<vmem>>, %arg7: memref<32x512xf32, #tpu.memory_space<vmem>>, %arg8: memref<2x512xf32, #tpu.memory_space<vmem>>) attributes {dimension_semantics = [#tpu.dimension_semantics<parallel>], iteration_bounds = array<i64: 1>, scalar_prefetch = 0 : i64, scratch_operands = 0 : i64, tpu.core_type = #tpu.core_type<tc>, window_params = [{transform_indices = @transform_0, window_bounds = array<i64: 2, 32>}, {transform_indices = @transform_1, window_bounds = array<i64: 2, 256>}, {pipeline_mode = #tpu.pipeline_mode<synchronous>, transform_indices = @transform_2, window_bounds = array<i64: 32, 512>}, {pipeline_mode = #tpu.pipeline_mode<synchronous>, transform_indices = @transform_3, window_bounds = array<i64: 1, 512>}, {pipeline_mode = #tpu.pipeline_mode<synchronous>, transform_indices = @transform_4, window_bounds = array<i64: 256, 512>}, {pipeline_mode = #tpu.pipeline_mode<synchronous>, transform_indices = @transform_5, window_bounds = array<i64: 512, 32>}, {pipeline_mode = #tpu.pipeline_mode<synchronous>, transform_indices = @transform_6, window_bounds = array<i64: 32, 512>}, {transform_indices = @transform_7, window_bounds = array<i64: 2, 512>}]} {
    %c0 = arith.constant 0 : index
    %c0_0 = arith.constant 0 : index
    %0 = vector.load %arg1[%c0, %c0_0] : memref<2x32xf32, #tpu.memory_space<vmem>>, vector<2x32xf32>
    %c0_1 = arith.constant 0 : index
    %c0_2 = arith.constant 0 : index
    %1 = vector.load %arg3[%c0_1, %c0_2] : memref<32x512xf32, #tpu.memory_space<vmem>>, vector<32x512xf32>
    %cst = arith.constant dense<0.000000e+00> : vector<2x512xf32>
    %2 = tpu.matmul %0, %1, %cst {dimension_numbers = #tpu.dot_dimension_numbers<[1], [0], [0], [1], [0, 0, 1, 1], [], []>} : vector<2x32xf32>, vector<32x512xf32>, vector<2x512xf32> -> vector<2x512xf32>
    %c0_3 = arith.constant 0 : index
    %c0_4 = arith.constant 0 : index
    %3 = vector.load %arg4[%c0_3, %c0_4] : memref<1x512xf32, #tpu.memory_space<vmem>>, vector<1x512xf32>
    %4 = vector.broadcast %3 : vector<1x512xf32> to vector<2x512xf32>
    %5 = arith.addf %2, %4 : vector<2x512xf32>
    %c0_5 = arith.constant 0 : index
    %c0_6 = arith.constant 0 : index
    %6 = vector.load %arg2[%c0_5, %c0_6] : memref<2x256xf32, #tpu.memory_space<vmem>>, vector<2x256xf32>
    %c0_7 = arith.constant 0 : index
    %c0_8 = arith.constant 0 : index
    %7 = vector.load %arg5[%c0_7, %c0_8] : memref<256x512xf32, #tpu.memory_space<vmem>>, vector<256x512xf32>
    %cst_9 = arith.constant dense<0.000000e+00> : vector<2x512xf32>
    %8 = tpu.matmul %6, %7, %cst_9 {dimension_numbers = #tpu.dot_dimension_numbers<[1], [0], [0], [1], [0, 0, 1, 1], [], []>} : vector<2x256xf32>, vector<256x512xf32>, vector<2x512xf32> -> vector<2x512xf32>
    %9 = arith.mulf %8, %5 : vector<2x512xf32>
    %c0_10 = arith.constant 0 : index
    %c0_11 = arith.constant 0 : index
    %10 = vector.load %arg6[%c0_10, %c0_11] : memref<512x32xf32, #tpu.memory_space<vmem>>, vector<512x32xf32>
    %cst_12 = arith.constant dense<0.000000e+00> : vector<2x32xf32>
    %11 = tpu.matmul %9, %10, %cst_12 {dimension_numbers = #tpu.dot_dimension_numbers<[1], [0], [0], [1], [0, 0, 1, 1], [], []>} : vector<2x512xf32>, vector<512x32xf32>, vector<2x32xf32> -> vector<2x32xf32>
    %12 = arith.negf %11 : vector<2x32xf32>
    %13 = math.exp %12 : vector<2x32xf32>
    %cst_13 = arith.constant 1.000000e+00 : f32
    %14 = vector.broadcast %cst_13 : f32 to vector<2x32xf32>
    %15 = arith.addf %14, %13 : vector<2x32xf32>
    %16 = arith.divf %14, %15 : vector<2x32xf32>
    %c0_14 = arith.constant 0 : index
    %c0_15 = arith.constant 0 : index
    %17 = vector.load %arg7[%c0_14, %c0_15] : memref<32x512xf32, #tpu.memory_space<vmem>>, vector<32x512xf32>
    %cst_16 = arith.constant dense<0.000000e+00> : vector<2x512xf32>
    %18 = tpu.matmul %16, %17, %cst_16 {dimension_numbers = #tpu.dot_dimension_numbers<[1], [0], [0], [1], [0, 0, 1, 1], [], []>} : vector<2x32xf32>, vector<32x512xf32>, vector<2x512xf32> -> vector<2x512xf32>
    %19 = arith.mulf %18, %8 : vector<2x512xf32>
    %c0_17 = arith.constant 0 : index
    %c0_18 = arith.constant 0 : index
    %20 = vector.load %arg8[%c0_17, %c0_18] : memref<2x512xf32, #tpu.memory_space<vmem>>, vector<2x512xf32>
    tpu.vector_store %arg8[%c0_17, %c0_18], %19 {strides = array<i32>} : memref<2x512xf32, #tpu.memory_space<vmem>>, vector<2x512xf32>,
    return
  }
  func.func @transform_0(%arg0: i32) -> (i32, i32) {
    %c0_i32 = arith.constant 0 : i32
    %c0_i32_0 = arith.constant 0 : i32
    return %arg0, %c0_i32 : i32, i32
  }
  func.func @transform_1(%arg0: i32) -> (i32, i32) {
    %c0_i32 = arith.constant 0 : i32
    %c0_i32_0 = arith.constant 0 : i32
    return %arg0, %c0_i32 : i32, i32
  }
  func.func @transform_2(%arg0: i32) -> (i32, i32) {
    %c0_i32 = arith.constant 0 : i32
    %c0_i32_0 = arith.constant 0 : i32
    %c0_i32_1 = arith.constant 0 : i32
    return %c0_i32, %c0_i32_0 : i32, i32
  }
  func.func @transform_3(%arg0: i32) -> (i32, i32) {
    %c0_i32 = arith.constant 0 : i32
    %c0_i32_0 = arith.constant 0 : i32
    %c0_i32_1 = arith.constant 0 : i32
    return %c0_i32, %c0_i32_0 : i32, i32
  }
  func.func @transform_4(%arg0: i32) -> (i32, i32) {
    %c0_i32 = arith.constant 0 : i32
    %c0_i32_0 = arith.constant 0 : i32
    %c0_i32_1 = arith.constant 0 : i32
    return %c0_i32, %c0_i32_0 : i32, i32
  }
  func.func @transform_5(%arg0: i32) -> (i32, i32) {
    %c0_i32 = arith.constant 0 : i32
    %c0_i32_0 = arith.constant 0 : i32
    %c0_i32_1 = arith.constant 0 : i32
    return %c0_i32, %c0_i32_0 : i32, i32
  }
  func.func @transform_6(%arg0: i32) -> (i32, i32) {
    %c0_i32 = arith.constant 0 : i32
    %c0_i32_0 = arith.constant 0 : i32
    %c0_i32_1 = arith.constant 0 : i32
    return %c0_i32, %c0_i32_0 : i32, i32
  }
  func.func @transform_7(%arg0: i32) -> (i32, i32) {
    %c0_i32 = arith.constant 0 : i32
    %c0_i32_0 = arith.constant 0 : i32
    return %arg0, %c0_i32 : i32, i32
  }
}

</mosaic_0001>

<bundles_post_ra>
// kernel: tpu_custom_call.1
= control target key start
LH: loop header
LB: loop body
LE: loop exit
PB: predicated region body
PF: predicated region fallthrough
CT: control target
= control target key end

     0   :  { %12 = vsyncpa [#allocation3], 0  ;;  %s1687_s0 = inlined_call_operand.vmem [shape: f32[2,32], index: 0, kind: input, shape index: {}]   ;;  %s1688_s1 = inlined_call_operand.vmem [shape: f32[2,256], index: 1, kind: input, shape index: {}]   ;;  %s1689_s2 = inlined_call_operand.vmem [shape: f32[32,512], index: 2, kind: input, shape index: {}]   ;;  %s1690_s3 = inlined_call_operand.vmem [shape: f32[1,512], index: 3, kind: input, shape index: {}]   ;;  %s1691_s4 = inlined_call_operand.hbm [shape: f32[256,512], index: 4, kind: input, shape index: {}]   ;;  %s1692_s5 = inlined_call_operand.vmem [shape: f32[512,32], index: 5, kind: input, shape index: {}]   ;;  %s1693_s6 = inlined_call_operand.vmem [shape: f32[32,512], index: 6, kind: input, shape index: {}]   ;;  %s1694_s7 = inlined_call_operand.hbm [shape: f32[2,512], index: 7, kind: output, shape index: {}]  }
   0x1   :  { %13 = vsyncpa [#allocation4], 0  ;;  %s1283_s24 = smov [#allocation2]   ;;  %s1235_s28 = scalar_lea.hbm %s1691_s4, 16384 }
   0x2   :  { %s27_s25 = sshll.u32 %s1283_s24, 4  ;;  %p1236_p0 = scmp.ne.s32.totalorder %s1691_s4, %s1235_s28  ;;  %s28_s25 = int_to_ptr.vmem [resolvable:$true] %s27_s25 }
   0x3   :  { %p1239_p1 = scmp.lt.u32.totalorder %s1235_s28, %s1691_s4 }
   0x5   :  { %p1241_p2 = pnand %p1239_p1, %p1236_p0 }
   0x7   :  { %1244 = shalt.err (!%p1241_p2)
}
   0x8   :  { %s1245_s10 = scalar_lea.vmem %s28_s25, 16384  ;;  %p1250_p4 = scmp.lt.s32.totalorder %s28_s25, %s28_s25 }
   0x9   :  { %p1246_p3 = scmp.ne.s32.totalorder %s28_s25, %s1245_s10  ;;  %p1251_p5 = scmp.lt.s32.totalorder %s1245_s10, %s1245_s10 }
   0xb   :  { %p1252_p6 = por %p1251_p5, %p1250_p4 }
   0xd   :  { %p1253_p7 = pnand %p1252_p6, %p1246_p3 }
   0xf   :  { %1256 = shalt.err (!%p1253_p7)
}
  0x10   :  { %s1284_s11 = smov 512   ;;  %s1285_s12 = smov 32  }
  0x11   :  { %33 = dma.hbm_to_vmem [thread:$0]  %s1691_s4, 16384, %s28_s25, [#allocation3], %s1284_s11, %s1284_s11, %s1285_s12  }
  0x12   :  { %1279 = dma.done.wait [#allocation3], 16384  }
  0x13   :  { %1280 = vsyncadd [#allocation3], 4294950912  ;;  %v1286_v0 = vmov 0.0   ;;  %v43_v1 = vld [vmem:[%s1689_s2 + $0x8] sm:$0xff]  ;;  %v45_v3 = vld [vmem:[%s1689_s2 + $0x18] sm:$0xff]  ;;  %vm80_vm0 = vcmask 261120  }
  0x14   :  { %148 = vmatprep.mubr.f32.mxu0 %v1286_v0  ;;  %219 = vmatprep.mubr.f32.mxu1 %v1286_v0  ;;  %v47_v2 = vld [vmem:[%s1689_s2 + $0x28] sm:$0xff]  ;;  %v49_v5 = vld [vmem:[%s1689_s2 + $0x38] sm:$0xff]  ;;  %v42_v6 = vld [vmem:[%s1689_s2] sm:$0xff] }
  0x15   :  { %v1001_v4 = vpack.c.bf16 %v47_v2, %v43_v1  ;;  %v46_v7 = vld [vmem:[%s1689_s2 + $0x20] sm:$0xff]  ;;  %v1009_v8 = vpack.c.bf16 %v49_v5, %v45_v3  ;;  %v44_v10 = vld [vmem:[%s1689_s2 + $0x10] sm:$0xff]  ;;  %v51_v12 = vld [vmem:[%s1689_s2 + $0x48] sm:$0xff] }
  0x16   :  { %v1003_v9 = vpack.c.bf16 %v46_v7, %v42_v6  ;;  %v48_v11 = vld [vmem:[%s1689_s2 + $0x30] sm:$0xff]  ;;  %v55_v14 = vld [vmem:[%s1689_s2 + $0x68] sm:$0xff]  ;;  %v53_v15 = vld [vmem:[%s1689_s2 + $0x58] sm:$0xff] }
  0x17   :  { %1002 = vmatprep.subr.bf16.mxu0 %v1001_v4  ;;  %v1011_v13 = vpack.c.bf16 %v48_v11, %v44_v10  ;;  %v57_v16 = vld [vmem:[%s1689_s2 + $0x78] sm:$0xff]  ;;  %1010 = vmatprep.subr.bf16.mxu1 %v1009_v8  ;;  %v1005_v17 = vpack.c.bf16 %v55_v14, %v51_v12  ;;  %v50_v19 = vld [vmem:[%s1689_s2 + $0x40] sm:$0xff]  ;;  %v52_v21 = vld [vmem:[%s1689_s2 + $0x50] sm:$0xff] }
  0x18   :  { %1004 = vmatpush1.bf16.msra.mxu0 %v1003_v9  ;;  %v1013_v18 = vpack.c.bf16 %v57_v16, %v53_v15  ;;  %v54_v20 = vld [vmem:[%s1689_s2 + $0x60] sm:$0xff]  ;;  %v56_v23 = vld [vmem:[%s1689_s2 + $0x70] sm:$0xff]  ;;  %v228_v24 = vld [vmem:[#allocation2 + $0x8] sm:$0xff] }
  0x19   :  { %1012 = vmatpush1.bf16.msra.mxu1 %v1011_v13  ;;  %v1007_v22 = vpack.c.bf16 %v54_v20, %v50_v19  ;;  %1006 = vmatprep.subr.bf16.mxu0 %v1005_v17  ;;  %v1015_v25 = vpack.c.bf16 %v56_v23, %v52_v21  ;;  %v41_v26 = vld [vmem:[%s1687_s0] sm:$0x3]  ;;  %v232_v27 = vld [vmem:[#allocation2 + $0x28] sm:$0xff]  ;;  %v230_v28 = vld [vmem:[#allocation2 + $0x18] sm:$0xff] }
  0x1a   :  { %1014 = vmatprep.subr.bf16.mxu1 %v1013_v18  ;;  %v234_v29 = vld [vmem:[#allocation2 + $0x38] sm:$0xff]  ;;  %v1017_v30 = vpack.c.bf16 %v232_v27, %v228_v24  ;;  %v227_v32 = vld [vmem:[#allocation2] sm:$0xff]  ;;  %v229_v34 = vld [vmem:[#allocation2 + $0x10] sm:$0xff] }
  0x1b   :  { %v1081_v31 = vpack.c.bf16 %v234_v29, %v230_v28  ;;  %v231_v33 = vld [vmem:[#allocation2 + $0x20] sm:$0xff]  ;;  %v233_v36 = vld [vmem:[#allocation2 + $0x30] sm:$0xff]  ;;  %v236_v37 = vld [vmem:[#allocation2 + $0x48] sm:$0xff] }
  0x1c   :  { %1008 = vmatpush1.bf16.msra.mxu0 %v1007_v22  ;;  %v1019_v35 = vpack.c.bf16 %v231_v33, %v227_v32  ;;  %v240_v38 = vld [vmem:[#allocation2 + $0x68] sm:$0xff]  ;;  %v1083_v39 = vpack.c.bf16 %v233_v36, %v229_v34  ;;  %v238_v41 = vld [vmem:[#allocation2 + $0x58] sm:$0xff]  ;;  %v235_v43 = vld [vmem:[#allocation2 + $0x40] sm:$0xff] }
  0x1d   :  { %1016 = vmatpush1.bf16.msra.mxu1 %v1015_v25  ;;  %1018 = vmatprep.subr.bf16.mxu0 %v1017_v30  ;;  %v1021_v40 = vpack.c.bf16 %v240_v38, %v236_v37  ;;  %v242_v42 = vld [vmem:[#allocation2 + $0x78] sm:$0xff]  ;;  %v239_v45 = vld [vmem:[#allocation2 + $0x60] sm:$0xff]  ;;  %v237_v46 = vld [vmem:[#allocation2 + $0x50] sm:$0xff] }
  0x1e   :  { %1082 = vmatprep.subr.bf16.mxu1 %v1081_v31  ;;  %v1085_v44 = vpack.c.bf16 %v242_v42, %v238_v41  ;;  %v241_v47 = vld [vmem:[#allocation2 + $0x70] sm:$0xff]  ;;  %v244_v48 = vld [vmem:[#allocation2 + $0x88] sm:$0xff]  ;;  %v246_v50 = vld [vmem:[#allocation2 + $0x98] sm:$0xff]  ;;  %v1023_v51 = vpack.c.bf16 %v239_v45, %v235_v43 }
  0x1f   :  { %925 = vmatmul.mubr.msk.f32.vlgmr.msra.gmra.mrb[0].mxu0 %vm80_vm0, %v41_v26  ;;  %v248_v49 = vld [vmem:[#allocation2 + $0xa8] sm:$0xff]  ;;  %v250_v52 = vld [vmem:[#allocation2 + $0xb8] sm:$0xff]  ;;  %v1087_v53 = vpack.c.bf16 %v241_v47, %v237_v46  ;;  %v243_v55 = vld [vmem:[#allocation2 + $0x80] sm:$0xff] }
  0x20   :  { %926 = vmatmul.mubr.msk.f32.vlgmr.msra.gmra.mrb[0].mxu1 %vm80_vm0, %v41_v26  ;;  %1020 = vmatpush1.bf16.msra.mxu0 %v1019_v35  ;;  %v1025_v54 = vpack.c.bf16 %v248_v49, %v244_v48  ;;  %v247_v56 = vld [vmem:[#allocation2 + $0xa0] sm:$0xff]  ;;  %v245_v57 = vld [vmem:[#allocation2 + $0x90] sm:$0xff]  ;;  %v1089_v58 = vpack.c.bf16 %v250_v52, %v246_v50  ;;  %v252_v60 = vld [vmem:[#allocation2 + $0xc8] sm:$0xff] }
  0x21   :  { %1084 = vmatpush1.bf16.msra.mxu1 %v1083_v39  ;;  %1022 = vmatprep.subr.bf16.mxu0 %v1021_v40  ;;  %v249_v59 = vld [vmem:[#allocation2 + $0xb0] sm:$0xff]  ;;  %v256_v61 = vld [vmem:[#allocation2 + $0xe8] sm:$0xff]  ;;  %v254_v62 = vld [vmem:[#allocation2 + $0xd8] sm:$0xff]  ;;  %v1027_v1 = vpack.c.bf16 %v247_v56, %v243_v55 }
  0x22   :  { %1086 = vmatprep.subr.bf16.mxu1 %v1085_v44  ;;  %v258_v63 = vld [vmem:[#allocation2 + $0xf8] sm:$0xff]  ;;  %v1091_v2 = vpack.c.bf16 %v249_v59, %v245_v57  ;;  %v1029_v3 = vpack.c.bf16 %v256_v61, %v252_v60  ;;  %v251_v4 = vld [vmem:[#allocation2 + $0xc0] sm:$0xff]  ;;  %v253_v6 = vld [vmem:[#allocation2 + $0xd0] sm:$0xff] }
  0x23   :  { %v255_v5 = vld [vmem:[#allocation2 + $0xe0] sm:$0xff]  ;;  %v1093_v7 = vpack.c.bf16 %v258_v63, %v254_v62  ;;  %v257_v8 = vld [vmem:[#allocation2 + $0xf0] sm:$0xff]  ;;  %v260_v9 = vld [vmem:[#allocation2 + $0x108] sm:$0xff] }
  0x24   :  { %1024 = vmatpush1.bf16.msra.mxu0 %v1023_v51  ;;  %v264_v10 = vld [vmem:[#allocation2 + $0x128] sm:$0xff]  ;;  %v262_v11 = vld [vmem:[#allocation2 + $0x118] sm:$0xff]  ;;  %v1031_v13 = vpack.c.bf16 %v255_v5, %v251_v4  ;;  %v1095_v14 = vpack.c.bf16 %v257_v8, %v253_v6  ;;  %v259_v16 = vld [vmem:[#allocation2 + $0x100] sm:$0xff] }
  0x25   :  { %1088 = vmatpush1.bf16.msra.mxu1 %v1087_v53  ;;  %1026 = vmatprep.subr.bf16.mxu0 %v1025_v54  ;;  %v266_v12 = vld [vmem:[#allocation2 + $0x138] sm:$0xff]  ;;  %v1033_v15 = vpack.c.bf16 %v264_v10, %v260_v9  ;;  %v263_v17 = vld [vmem:[#allocation2 + $0x120] sm:$0xff]  ;;  %v261_v18 = vld [vmem:[#allocation2 + $0x110] sm:$0xff] }
  0x26   :  { %1090 = vmatprep.subr.bf16.mxu1 %v1089_v58  ;;  %v1097_v19 = vpack.c.bf16 %v266_v12, %v262_v11  ;;  %v265_v20 = vld [vmem:[#allocation2 + $0x130] sm:$0xff]  ;;  %v268_v21 = vld [vmem:[#allocation2 + $0x148] sm:$0xff]  ;;  %v270_v23 = vld [vmem:[#allocation2 + $0x158] sm:$0xff]  ;;  %v1035_v25 = vpack.c.bf16 %v263_v17, %v259_v16 }
  0x27   :  { %v272_v22 = vld [vmem:[#allocation2 + $0x168] sm:$0xff]  ;;  %v274_v24 = vld [vmem:[#allocation2 + $0x178] sm:$0xff]  ;;  %v1099_v26 = vpack.c.bf16 %v265_v20, %v261_v18  ;;  %v267_v28 = vld [vmem:[#allocation2 + $0x140] sm:$0xff] }
  0x28   :  { %1028 = vmatpush1.bf16.msra.mxu0 %v1027_v1  ;;  %v1037_v27 = vpack.c.bf16 %v272_v22, %v268_v21  ;;  %v271_v29 = vld [vmem:[#allocation2 + $0x160] sm:$0xff]  ;;  %v269_v30 = vld [vmem:[#allocation2 + $0x150] sm:$0xff]  ;;  %v1101_v31 = vpack.c.bf16 %v274_v24, %v270_v23  ;;  %v276_v33 = vld [vmem:[#allocation2 + $0x188] sm:$0xff] }
  0x29   :  { %1092 = vmatpush1.bf16.msra.mxu1 %v1091_v2  ;;  %1030 = vmatprep.subr.bf16.mxu0 %v1029_v3  ;;  %v273_v32 = vld [vmem:[#allocation2 + $0x170] sm:$0xff]  ;;  %v280_v34 = vld [vmem:[#allocation2 + $0x1a8] sm:$0xff]  ;;  %v278_v35 = vld [vmem:[#allocation2 + $0x198] sm:$0xff]  ;;  %v1039_v37 = vpack.c.bf16 %v271_v29, %v267_v28 }
  0x2a   :  { %1094 = vmatprep.subr.bf16.mxu1 %v1093_v7  ;;  %v282_v36 = vld [vmem:[#allocation2 + $0x1b8] sm:$0xff]  ;;  %v1103_v38 = vpack.c.bf16 %v273_v32, %v269_v30  ;;  %v1041_v39 = vpack.c.bf16 %v280_v34, %v276_v33  ;;  %v275_v40 = vld [vmem:[#allocation2 + $0x180] sm:$0xff]  ;;  %v277_v42 = vld [vmem:[#allocation2 + $0x190] sm:$0xff] }
  0x2b   :  { %v279_v41 = vld [vmem:[#allocation2 + $0x1a0] sm:$0xff]  ;;  %v1105_v43 = vpack.c.bf16 %v282_v36, %v278_v35  ;;  %v281_v44 = vld [vmem:[#allocation2 + $0x1b0] sm:$0xff]  ;;  %v284_v45 = vld [vmem:[#allocation2 + $0x1c8] sm:$0xff] }
  0x2c   :  { %1032 = vmatpush1.bf16.msra.mxu0 %v1031_v13  ;;  %v288_v46 = vld [vmem:[#allocation2 + $0x1e8] sm:$0xff]  ;;  %v286_v47 = vld [vmem:[#allocation2 + $0x1d8] sm:$0xff]  ;;  %v1043_v49 = vpack.c.bf16 %v279_v41, %v275_v40  ;;  %v1107_v50 = vpack.c.bf16 %v281_v44, %v277_v42  ;;  %v283_v52 = vld [vmem:[#allocation2 + $0x1c0] sm:$0xff] }
  0x2d   :  { %1096 = vmatpush1.bf16.msra.mxu1 %v1095_v14  ;;  %1034 = vmatprep.subr.bf16.mxu0 %v1033_v15  ;;  %v290_v48 = vld [vmem:[#allocation2 + $0x1f8] sm:$0xff]  ;;  %v1045_v51 = vpack.c.bf16 %v288_v46, %v284_v45  ;;  %v287_v53 = vld [vmem:[#allocation2 + $0x1e0] sm:$0xff]  ;;  %v285_v54 = vld [vmem:[#allocation2 + $0x1d0] sm:$0xff] }
  0x2e   :  { %1098 = vmatprep.subr.bf16.mxu1 %v1097_v19  ;;  %v1109_v55 = vpack.c.bf16 %v290_v48, %v286_v47  ;;  %v289_v56 = vld [vmem:[#allocation2 + $0x1f0] sm:$0xff]  ;;  %v292_v57 = vld [vmem:[#allocation2 + $0x208] sm:$0xff]  ;;  %v294_v59 = vld [vmem:[#allocation2 + $0x218] sm:$0xff]  ;;  %v1047_v61 = vpack.c.bf16 %v287_v53, %v283_v52 }
  0x2f   :  { %v296_v58 = vld [vmem:[#allocation2 + $0x228] sm:$0xff]  ;;  %v298_v60 = vld [vmem:[#allocation2 + $0x238] sm:$0xff]  ;;  %v1111_v62 = vpack.c.bf16 %v289_v56, %v285_v54  ;;  %v291_v1 = vld [vmem:[#allocation2 + $0x200] sm:$0xff] }
  0x30   :  { %1036 = vmatpush1.bf16.msra.mxu0 %v1035_v25  ;;  %v1049_v63 = vpack.c.bf16 %v296_v58, %v292_v57  ;;  %v295_v2 = vld [vmem:[#allocation2 + $0x220] sm:$0xff]  ;;  %v293_v3 = vld [vmem:[#allocation2 + $0x210] sm:$0xff]  ;;  %v1113_v4 = vpack.c.bf16 %v298_v60, %v294_v59  ;;  %v300_v6 = vld [vmem:[#allocation2 + $0x248] sm:$0xff] }
  0x31   :  { %1100 = vmatpush1.bf16.msra.mxu1 %v1099_v26  ;;  %1038 = vmatprep.subr.bf16.mxu0 %v1037_v27  ;;  %v297_v5 = vld [vmem:[#allocation2 + $0x230] sm:$0xff]  ;;  %v304_v7 = vld [vmem:[#allocation2 + $0x268] sm:$0xff]  ;;  %v302_v8 = vld [vmem:[#allocation2 + $0x258] sm:$0xff]  ;;  %v1051_v10 = vpack.c.bf16 %v295_v2, %v291_v1 }
  0x32   :  { %1102 = vmatprep.subr.bf16.mxu1 %v1101_v31  ;;  %v306_v9 = vld [vmem:[#allocation2 + $0x278] sm:$0xff]  ;;  %v1115_v11 = vpack.c.bf16 %v297_v5, %v293_v3  ;;  %v1053_v12 = vpack.c.bf16 %v304_v7, %v300_v6  ;;  %v299_v13 = vld [vmem:[#allocation2 + $0x240] sm:$0xff]  ;;  %v301_v15 = vld [vmem:[#allocation2 + $0x250] sm:$0xff] }
  0x33   :  { %v303_v14 = vld [vmem:[#allocation2 + $0x260] sm:$0xff]  ;;  %v1117_v16 = vpack.c.bf16 %v306_v9, %v302_v8  ;;  %v305_v17 = vld [vmem:[#allocation2 + $0x270] sm:$0xff]  ;;  %v308_v18 = vld [vmem:[#allocation2 + $0x288] sm:$0xff] }
  0x34   :  { %1040 = vmatpush1.bf16.msra.mxu0 %v1039_v37  ;;  %v312_v19 = vld [vmem:[#allocation2 + $0x2a8] sm:$0xff]  ;;  %v310_v20 = vld [vmem:[#allocation2 + $0x298] sm:$0xff]  ;;  %v1055_v22 = vpack.c.bf16 %v303_v14, %v299_v13  ;;  %v1119_v23 = vpack.c.bf16 %v305_v17, %v301_v15  ;;  %v307_v25 = vld [vmem:[#allocation2 + $0x280] sm:$0xff] }
  0x35   :  { %1104 = vmatpush1.bf16.msra.mxu1 %v1103_v38  ;;  %1042 = vmatprep.subr.bf16.mxu0 %v1041_v39  ;;  %v314_v21 = vld [vmem:[#allocation2 + $0x2b8] sm:$0xff]  ;;  %v1057_v24 = vpack.c.bf16 %v312_v19, %v308_v18  ;;  %v311_v26 = vld [vmem:[#allocation2 + $0x2a0] sm:$0xff]  ;;  %v309_v27 = vld [vmem:[#allocation2 + $0x290] sm:$0xff] }
  0x36   :  { %1106 = vmatprep.subr.bf16.mxu1 %v1105_v43  ;;  %v1121_v28 = vpack.c.bf16 %v314_v21, %v310_v20  ;;  %v313_v29 = vld [vmem:[#allocation2 + $0x2b0] sm:$0xff]  ;;  %v316_v30 = vld [vmem:[#allocation2 + $0x2c8] sm:$0xff]  ;;  %v318_v32 = vld [vmem:[#allocation2 + $0x2d8] sm:$0xff]  ;;  %v1059_v34 = vpack.c.bf16 %v311_v26, %v307_v25 }
  0x37   :  { %v320_v31 = vld [vmem:[#allocation2 + $0x2e8] sm:$0xff]  ;;  %v322_v33 = vld [vmem:[#allocation2 + $0x2f8] sm:$0xff]  ;;  %v1399_v35 = vld.sshfl [vmem:[%s1688_s1] sm:$0x33 pattern:$0x76325410]  ;;  %v1123_v36 = vpack.c.bf16 %v313_v29, %v309_v27 }
  0x38   :  { %1044 = vmatpush1.bf16.msra.mxu0 %v1043_v49  ;;  %v1061_v37 = vpack.c.bf16 %v320_v31, %v316_v30  ;;  %v315_v38 = vld [vmem:[#allocation2 + $0x2c0] sm:$0xff]  ;;  %v317_v40 = vld [vmem:[#allocation2 + $0x2d0] sm:$0xff]  ;;  %v363_v41 = vcombine.high %v1399_v35, %v1399_v35  ;;  %v1125_v42 = vpack.c.bf16 %v322_v33, %v318_v32  ;;  %v324_v44 = vld [vmem:[#allocation2 + $0x308] sm:$0xff] }
  0x39   :  { %1108 = vmatpush1.bf16.msra.mxu1 %v1107_v50  ;;  %1046 = vmatprep.subr.bf16.mxu0 %v1045_v51  ;;  %v319_v39 = vld [vmem:[#allocation2 + $0x2e0] sm:$0xff]  ;;  %v321_v43 = vld [vmem:[#allocation2 + $0x2f0] sm:$0xff]  ;;  %v328_v45 = vld [vmem:[#allocation2 + $0x328] sm:$0xff] }
  0x3a   :  { %1110 = vmatprep.subr.bf16.mxu1 %v1109_v55  ;;  %v326_v46 = vld [vmem:[#allocation2 + $0x318] sm:$0xff]  ;;  %430 = vmatprep.mubr.f32.mxu0 %v363_v41  ;;  %v1063_v48 = vpack.c.bf16 %v319_v39, %v315_v38  ;;  %v1127_v49 = vpack.c.bf16 %v321_v43, %v317_v40  ;;  %v1065_v50 = vpack.c.bf16 %v328_v45, %v324_v44  ;;  %v323_v51 = vld [vmem:[#allocation2 + $0x300] sm:$0xff]  ;;  %v325_v53 = vld [vmem:[#allocation2 + $0x310] sm:$0xff] }
  0x3b   :  { %v330_v47 = vld [vmem:[#allocation2 + $0x338] sm:$0xff]  ;;  %501 = vmatprep.mubr.f32.mxu1 %v363_v41  ;;  %v327_v52 = vld [vmem:[#allocation2 + $0x320] sm:$0xff]  ;;  %v329_v55 = vld [vmem:[#allocation2 + $0x330] sm:$0xff] }
  0x3c   :  { %1048 = vmatpush1.bf16.msra.mxu0 %v1047_v61  ;;  %v1129_v54 = vpack.c.bf16 %v330_v47, %v326_v46  ;;  %v332_v56 = vld [vmem:[#allocation2 + $0x348] sm:$0xff]  ;;  %v334_v58 = vld [vmem:[#allocation2 + $0x358] sm:$0xff]  ;;  %v1067_v60 = vpack.c.bf16 %v327_v52, %v323_v51  ;;  %v1131_v61 = vpack.c.bf16 %v329_v55, %v325_v53  ;;  %v335_v1 = vld [vmem:[#allocation2 + $0x360] sm:$0xff] }
  0x3d   :  { %1112 = vmatpush1.bf16.msra.mxu1 %v1111_v62  ;;  %1050 = vmatprep.subr.bf16.mxu0 %v1049_v63  ;;  %v336_v57 = vld [vmem:[#allocation2 + $0x368] sm:$0xff]  ;;  %v338_v59 = vld [vmem:[#allocation2 + $0x378] sm:$0xff]  ;;  %v331_v63 = vld [vmem:[#allocation2 + $0x340] sm:$0xff] }
  0x3e   :  { %1114 = vmatprep.subr.bf16.mxu1 %v1113_v4  ;;  %v1069_v62 = vpack.c.bf16 %v336_v57, %v332_v56  ;;  %v333_v2 = vld [vmem:[#allocation2 + $0x350] sm:$0xff]  ;;  %v1133_v3 = vpack.c.bf16 %v338_v59, %v334_v58  ;;  %v340_v5 = vld [vmem:[#allocation2 + $0x388] sm:$0xff]  ;;  %v342_v7 = vld [vmem:[#allocation2 + $0x398] sm:$0xff]  ;;  %v1071_v9 = vpack.c.bf16 %v335_v1, %v331_v63 }
  0x3f   :  { %v337_v4 = vld [vmem:[#allocation2 + $0x370] sm:$0xff]  ;;  %v344_v6 = vld [vmem:[#allocation2 + $0x3a8] sm:$0xff]  ;;  %v346_v8 = vld [vmem:[#allocation2 + $0x3b8] sm:$0xff] }
  0x40   :  { %1052 = vmatpush1.bf16.msra.mxu0 %v1051_v10  ;;  %v1135_v10 = vpack.c.bf16 %v337_v4, %v333_v2  ;;  %v343_v13 = vld [vmem:[#allocation2 + $0x3a0] sm:$0xff]  ;;  %v341_v14 = vld [vmem:[#allocation2 + $0x390] sm:$0xff]  ;;  %v1137_v15 = vpack.c.bf16 %v346_v8, %v342_v7  ;;  %v348_v17 = vld [vmem:[#allocation2 + $0x3c8] sm:$0xff] }
  0x41   :  { %1116 = vmatpush1.bf16.msra.mxu1 %v1115_v11  ;;  %1054 = vmatprep.subr.bf16.mxu0 %v1053_v12  ;;  %v1073_v11 = vpack.c.bf16 %v344_v6, %v340_v5  ;;  %v339_v12 = vld [vmem:[#allocation2 + $0x380] sm:$0xff]  ;;  %v352_v18 = vld [vmem:[#allocation2 + $0x3e8] sm:$0xff]  ;;  %v350_v19 = vld [vmem:[#allocation2 + $0x3d8] sm:$0xff] }
  0x42   :  { %1118 = vmatprep.subr.bf16.mxu1 %v1117_v16  ;;  %v345_v16 = vld [vmem:[#allocation2 + $0x3b0] sm:$0xff]  ;;  %v354_v20 = vld [vmem:[#allocation2 + $0x3f8] sm:$0xff]  ;;  %v1075_v21 = vpack.c.bf16 %v343_v13, %v339_v12  ;;  %v351_v25 = vld [vmem:[#allocation2 + $0x3e0] sm:$0xff] }
  0x43   :  { %v1141_v26 = vpack.c.bf16 %v354_v20, %v350_v19  ;;  %v349_v27 = vld [vmem:[#allocation2 + $0x3d0] sm:$0xff]  ;;  %v528_v31 = vld [vmem:[%s1692_s5 + $0x80] sm:$0xff]  ;;  %v529_v32 = vld [vmem:[%s1692_s5 + $0x88] sm:$0xff] }
  0x44   :  { %1056 = vmatpush1.bf16.msra.mxu0 %v1055_v22  ;;  %v1139_v22 = vpack.c.bf16 %v345_v16, %v341_v14  ;;  %v560_v33 = vld [vmem:[%s1692_s5 + $0x180] sm:$0xff]  ;;  %v545_v41 = vld [vmem:[%s1692_s5 + $0x108] sm:$0xff]  ;;  %v531_v44 = vld [vmem:[%s1692_s5 + $0x98] sm:$0xff] }
  0x45   :  { %1120 = vmatpush1.bf16.msra.mxu1 %v1119_v23  ;;  %1058 = vmatprep.subr.bf16.mxu0 %v1057_v24  ;;  %v1077_v23 = vpack.c.bf16 %v352_v18, %v348_v17  ;;  %v347_v24 = vld [vmem:[#allocation2 + $0x3c0] sm:$0xff]  ;;  %v562_v45 = vld [vmem:[%s1692_s5 + $0x190] sm:$0xff]  ;;  %v563_v46 = vld [vmem:[%s1692_s5 + $0x198] sm:$0xff] }
  0x46   :  { %1122 = vmatprep.subr.bf16.mxu1 %v1121_v28  ;;  %v353_v28 = vld [vmem:[#allocation2 + $0x3f0] sm:$0xff]  ;;  %v1079_v29 = vpack.c.bf16 %v351_v25, %v347_v24  ;;  %v544_v40 = vld [vmem:[%s1692_s5 + $0x100] sm:$0xff]  ;;  %v547_v53 = vld [vmem:[%s1692_s5 + $0x118] sm:$0xff] }
  0x47   :  { %v1143_v30 = vpack.c.bf16 %v353_v28, %v349_v27  ;;  %v1179_v43 = vpack.c.bf16 %v545_v41, %v544_v40  ;;  %v546_v51 = vld [vmem:[%s1692_s5 + $0x110] sm:$0xff]  ;;  %v533_v55 = vld [vmem:[%s1692_s5 + $0xa8] sm:$0xff]  ;;  %v564_v58 = vld [vmem:[%s1692_s5 + $0x1a0] sm:$0xff] }
  0x48   :  { %1060 = vmatpush1.bf16.msra.mxu0 %v1059_v34  ;;  %v1145_v34 = vpack.c.bf16 %v529_v32, %v528_v31  ;;  %v1183_v56 = vpack.c.bf16 %v547_v53, %v546_v51  ;;  %v565_v59 = vld [vmem:[%s1692_s5 + $0x1a8] sm:$0xff]  ;;  %v548_v63 = vld [vmem:[%s1692_s5 + $0x120] sm:$0xff]  ;;  %v535_v4 = vld [vmem:[%s1692_s5 + $0xb8] sm:$0xff] }
  0x49   :  { %1124 = vmatpush1.bf16.msra.mxu1 %v1123_v36  ;;  %1062 = vmatprep.subr.bf16.mxu0 %v1061_v37  ;;  %v561_v36 = vld [vmem:[%s1692_s5 + $0x188] sm:$0xff]  ;;  %v566_v5 = vld [vmem:[%s1692_s5 + $0x1b0] sm:$0xff]  ;;  %v567_v8 = vld [vmem:[%s1692_s5 + $0x1b8] sm:$0xff] }
  0x4a   :  { %1126 = vmatprep.subr.bf16.mxu1 %v1125_v42  ;;  %v513_v37 = vld [vmem:[%s1692_s5 + $0x8] sm:$0xff]  ;;  %v1177_v38 = vpack.c.bf16 %v561_v36, %v560_v33  ;;  %v530_v42 = vld [vmem:[%s1692_s5 + $0x90] sm:$0xff]  ;;  %v551_v13 = vld [vmem:[%s1692_s5 + $0x138] sm:$0xff] }
  0x4b   :  { %v1149_v47 = vpack.c.bf16 %v531_v44, %v530_v42  ;;  %v549_v1 = vld [vmem:[%s1692_s5 + $0x128] sm:$0xff]  ;;  %v550_v12 = vld [vmem:[%s1692_s5 + $0x130] sm:$0xff]  ;;  %v536_v14 = vld [vmem:[%s1692_s5 + $0xc0] sm:$0xff] }
  0x4c   :  { %1064 = vmatpush1.bf16.msra.mxu0 %v1063_v48  ;;  %v1181_v48 = vpack.c.bf16 %v563_v46, %v562_v45  ;;  %v1187_v6 = vpack.c.bf16 %v549_v1, %v548_v63  ;;  %v568_v16 = vld [vmem:[%s1692_s5 + $0x1c0] sm:$0xff]  ;;  %v569_v17 = vld [vmem:[%s1692_s5 + $0x1c8] sm:$0xff]  ;;  %v1191_v19 = vpack.c.bf16 %v551_v13, %v550_v12  ;;  %v539_v27 = vld [vmem:[%s1692_s5 + $0xd8] sm:$0xff] }
  0x4d   :  { %1128 = vmatpush1.bf16.msra.mxu1 %v1127_v49  ;;  %1066 = vmatprep.subr.bf16.mxu0 %v1065_v50  ;;  %v514_v49 = vld [vmem:[%s1692_s5 + $0x10] sm:$0xff]  ;;  %v515_v50 = vld [vmem:[%s1692_s5 + $0x18] sm:$0xff]  ;;  %v1193_v24 = vpack.c.bf16 %v569_v17, %v568_v16  ;;  %v553_v25 = vld [vmem:[%s1692_s5 + $0x148] sm:$0xff] }
  0x4e   :  { %1130 = vmatprep.subr.bf16.mxu1 %v1129_v54  ;;  %v1151_v52 = vpack.c.bf16 %v515_v50, %v514_v49  ;;  %v532_v54 = vld [vmem:[%s1692_s5 + $0xa0] sm:$0xff]  ;;  %v570_v28 = vld [vmem:[%s1692_s5 + $0x1d0] sm:$0xff]  ;;  %v573_v41 = vld [vmem:[%s1692_s5 + $0x1e8] sm:$0xff] }
  0x4f   :  { %v1153_v57 = vpack.c.bf16 %v533_v55, %v532_v54  ;;  %v522_v33 = vld [vmem:[%s1692_s5 + $0x50] sm:$0xff]  ;;  %v572_v40 = vld [vmem:[%s1692_s5 + $0x1e0] sm:$0xff]  ;;  %v525_v46 = vld [vmem:[%s1692_s5 + $0x68] sm:$0xff] }
  0x50   :  { %1068 = vmatpush1.bf16.msra.mxu0 %v1067_v60  ;;  %v516_v60 = vld [vmem:[%s1692_s5 + $0x20] sm:$0xff]  ;;  %v554_v36 = vld [vmem:[%s1692_s5 + $0x150] sm:$0xff]  ;;  %v557_v49 = vld [vmem:[%s1692_s5 + $0x168] sm:$0xff] }
  0x51   :  { %1132 = vmatpush1.bf16.msra.mxu1 %v1131_v61  ;;  %1070 = vmatprep.subr.bf16.mxu0 %v1069_v62  ;;  %v1185_v61 = vpack.c.bf16 %v565_v59, %v564_v58  ;;  %v517_v62 = vld [vmem:[%s1692_s5 + $0x28] sm:$0xff]  ;;  %v524_v45 = vld [vmem:[%s1692_s5 + $0x60] sm:$0xff]  ;;  %v543_v53 = vld [vmem:[%s1692_s5 + $0xf8] sm:$0xff] }
  0x52   :  { %1134 = vmatprep.subr.bf16.mxu1 %v1133_v3  ;;  %v1155_v2 = vpack.c.bf16 %v517_v62, %v516_v60  ;;  %v534_v3 = vld [vmem:[%s1692_s5 + $0xb0] sm:$0xff]  ;;  %v1171_v50 = vpack.c.bf16 %v525_v46, %v524_v45  ;;  %v527_v58 = vld [vmem:[%s1692_s5 + $0x78] sm:$0xff]  ;;  %v730_v45 = vld [vmem:[%s1693_s6 + $0x40] sm:$0xff] }
  0x53   :  { %v1157_v7 = vpack.c.bf16 %v535_v4, %v534_v3  ;;  %v574_v54 = vld [vmem:[%s1692_s5 + $0x1f0] sm:$0xff]  ;;  %v559_v62 = vld [vmem:[%s1692_s5 + $0x178] sm:$0xff]  ;;  %v734_v46 = vld [vmem:[%s1693_s6 + $0x60] sm:$0xff] }
  0x54   :  { %1072 = vmatpush1.bf16.msra.mxu0 %v1071_v9  ;;  %v518_v9 = vld [vmem:[%s1692_s5 + $0x30] sm:$0xff] }
  0x55   :  { %1136 = vmatpush1.bf16.msra.mxu1 %v1135_v10  ;;  %1074 = vmatprep.subr.bf16.mxu0 %v1073_v11  ;;  %v519_v10 = vld [vmem:[%s1692_s5 + $0x38] sm:$0xff]  ;;  %v1189_v11 = vpack.c.bf16 %v567_v8, %v566_v5  ;;  %v60_v5 = vlaneseq  ;;  %v58_v8 = vld [vmem:[%s1690_s3] sm:$0xf] }
  0x56   :  { %1138 = vmatprep.subr.bf16.mxu1 %v1137_v15  ;;  %v537_v15 = vld [vmem:[%s1692_s5 + $0xc8] sm:$0xff]  ;;  %v1159_v18 = vpack.c.bf16 %v519_v10, %v518_v9 }
  0x57   :  { %v1161_v20 = vpack.c.bf16 %v537_v15, %v536_v14 }
  0x58   :  { %1076 = vmatpush1.bf16.msra.mxu0 %v1075_v21  ;;  %v520_v21 = vld [vmem:[%s1692_s5 + $0x40] sm:$0xff] }
  0x59   :  { %1140 = vmatpush1.bf16.msra.mxu1 %v1139_v22  ;;  %1078 = vmatprep.subr.bf16.mxu0 %v1077_v23  ;;  %v521_v22 = vld [vmem:[%s1692_s5 + $0x48] sm:$0xff]  ;;  %v552_v23 = vld [vmem:[%s1692_s5 + $0x140] sm:$0xff] }
  0x5a   :  { %1142 = vmatprep.subr.bf16.mxu1 %v1141_v26  ;;  %v538_v26 = vld [vmem:[%s1692_s5 + $0xd0] sm:$0xff]  ;;  %v1195_v31 = vpack.c.bf16 %v553_v25, %v552_v23 }
  0x5b   :  { %v1165_v32 = vpack.c.bf16 %v539_v27, %v538_v26 }
  0x5c   :  { %1080 = vmatpush1.bf16.msra.mxu0 %v1079_v29  ;;  %v571_v29 = vld [vmem:[%s1692_s5 + $0x1d8] sm:$0xff] }
  0x5d   :  { %1144 = vmatpush1.bf16.msra.mxu1 %v1143_v30  ;;  %1146 = vmatprep.subr.bf16.mxu0 %v1145_v34  ;;  %v1163_v30 = vpack.c.bf16 %v521_v22, %v520_v21  ;;  %v523_v34 = vld [vmem:[%s1692_s5 + $0x58] sm:$0xff] }
  0x5e   :  { %1178 = vmatprep.subr.bf16.mxu1 %v1177_v38  ;;  %v540_v38 = vld [vmem:[%s1692_s5 + $0xe0] sm:$0xff]  ;;  %v1167_v42 = vpack.c.bf16 %v523_v34, %v522_v33 }
  0x5f   :  { %431 = vmatmul.mubr.f32.vlgmr.msra.gmra.mrb[2].mxu0 %v1399_v35  ;;  %v726_v33 = vld [vmem:[%s1693_s6 + $0x20] sm:$0xff] }
  0x60   :  { %502 = vmatmul.mubr.f32.vlgmr.msra.gmra.mrb[2].mxu1 %v1399_v35  ;;  %v512_v35 = vld [vmem:[%s1692_s5] sm:$0xff] }
  0x61   :  { %v1147_v39 = vpack.c.bf16 %v513_v37, %v512_v35  ;;  %1180 = vmatpush3.bf16.msra.mxu1 %v1179_v43  ;;  %v1197_v35 = vpack.c.bf16 %v571_v29, %v570_v28  ;;  %v555_v37 = vld [vmem:[%s1692_s5 + $0x158] sm:$0xff]  ;;  %v723_v28 = vld [vmem:[%s1693_s6 + $0x8] sm:$0xff] }
  0x62   :  { %1182 = vmatprep.subr.bf16.mxu1 %v1181_v48  ;;  %v1199_v43 = vpack.c.bf16 %v555_v37, %v554_v36  ;;  %v556_v48 = vld [vmem:[%s1692_s5 + $0x160] sm:$0xff]  ;;  %v727_v29 = vld [vmem:[%s1693_s6 + $0x28] sm:$0xff]  ;;  %v728_v37 = vld [vmem:[%s1693_s6 + $0x30] sm:$0xff] }
  0x63   :  { %1148 = vmatpush3.bf16.msra.mxu0 %v1147_v39  ;;  %v541_v39 = vld [vmem:[%s1692_s5 + $0xe8] sm:$0xff]  ;;  %v1203_v51 = vpack.c.bf16 %v557_v49, %v556_v48  ;;  %v1215_v48 = vpack.c.bf16 %v734_v46, %v730_v45  ;;  %v736_v49 = vld [vmem:[%s1693_s6 + $0x70] sm:$0xff] }
  0x64   :  { %1150 = vmatprep.subr.bf16.mxu0 %v1149_v47  ;;  %v1169_v44 = vpack.c.bf16 %v541_v39, %v540_v38  ;;  %v1201_v47 = vpack.c.bf16 %v573_v41, %v572_v40  ;;  %v731_v38 = vld [vmem:[%s1693_s6 + $0x48] sm:$0xff]  ;;  %v733_v41 = vld [vmem:[%s1693_s6 + $0x58] sm:$0xff] }
  0x65   :  { %1184 = vmatpush3.bf16.msra.mxu1 %v1183_v56  ;;  %v575_v56 = vld [vmem:[%s1692_s5 + $0x1f8] sm:$0xff]  ;;  %v735_v40 = vld [vmem:[%s1693_s6 + $0x68] sm:$0xff] }
  0x66   :  { %1186 = vmatprep.subr.bf16.mxu1 %v1185_v61  ;;  %v1205_v59 = vpack.c.bf16 %v575_v56, %v574_v54  ;;  %v558_v61 = vld [vmem:[%s1692_s5 + $0x170] sm:$0xff] }
  0x67   :  { %1152 = vmatpush3.bf16.msra.mxu0 %v1151_v52  ;;  %v542_v52 = vld [vmem:[%s1692_s5 + $0xf0] sm:$0xff]  ;;  %v1207_v63 = vpack.c.bf16 %v559_v62, %v558_v61  ;;  %v1287_v62 = vmov 1983009808  }
  0x68   :  { %1154 = vmatprep.subr.bf16.mxu0 %v1153_v57  ;;  %v1173_v55 = vpack.c.bf16 %v543_v53, %v542_v52  ;;  %v526_v57 = vld [vmem:[%s1692_s5 + $0x70] sm:$0xff] }
  0x69   :  { %1188 = vmatpush3.bf16.msra.mxu1 %v1187_v6  ;;  %v1175_v60 = vpack.c.bf16 %v527_v58, %v526_v57  ;;  %v1597_v6 = vshrl.u32 %v60_v5, 7 }
  0x6a   :  { %1190 = vmatprep.subr.bf16.mxu1 %v1189_v11 }
  0x6b   :  { %1156 = vmatpush3.bf16.msra.mxu0 %v1155_v2  ;;  %v70_v9 = vsub.s32 2, %v1597_v6  ;;  %v66_v10 = vsub.s32 1, %v1597_v6  ;;  %v74_v11 = vsub.s32 3, %v1597_v6 }
  0x6c   :  { %1158 = vmatprep.subr.bf16.mxu0 %v1157_v7  ;;  %v62_v7 = vsub.s32 0, %v1597_v6 }
  0x6d   :  { %1192 = vmatpush3.bf16.msra.mxu1 %v1191_v19  ;;  %v71_v13 = vrot.slane %v58_v8, %v70_v9  ;;  %v67_v14 = vrot.slane %v58_v8, %v66_v10  ;;  %v75_v15 = vrot.slane %v58_v8, %v74_v11 }
  0x6e   :  { %1194 = vmatprep.subr.bf16.mxu1 %v1193_v24  ;;  %v63_v12 = vrot.slane %v58_v8, %v62_v7 }
  0x6f   :  { %1160 = vmatpush3.bf16.msra.mxu0 %v1159_v18 }
  0x70   :  { %1162 = vmatprep.subr.bf16.mxu0 %v1161_v20 }
  0x71   :  { %1196 = vmatpush3.bf16.msra.mxu1 %v1195_v31  ;;  %v1209_v31 = vpack.c.bf16 %v727_v29, %v723_v28 }
  0x72   :  { %1198 = vmatprep.subr.bf16.mxu1 %v1197_v35  ;;  %v724_v35 = vld [vmem:[%s1693_s6 + $0x10] sm:$0xff] }
  0x73   :  { %1164 = vmatpush3.bf16.msra.mxu0 %v1163_v30  ;;  %v725_v30 = vld [vmem:[%s1693_s6 + $0x18] sm:$0xff]  ;;  %v1219_v39 = vpack.c.bf16 %v728_v37, %v724_v35 }
  0x74   :  { %1166 = vmatprep.subr.bf16.mxu0 %v1165_v32  ;;  %v729_v32 = vld [vmem:[%s1693_s6 + $0x38] sm:$0xff] }
  0x75   :  { %1200 = vmatpush3.bf16.msra.mxu1 %v1199_v43  ;;  %v1217_v34 = vpack.c.bf16 %v729_v32, %v725_v30  ;;  %v1213_v43 = vpack.c.bf16 %v735_v40, %v731_v38 }
  0x76   :  { %1202 = vmatprep.subr.bf16.mxu1 %v1201_v47  ;;  %v732_v47 = vld [vmem:[%s1693_s6 + $0x50] sm:$0xff] }
  0x77   :  { %1168 = vmatpush3.bf16.msra.mxu0 %v1167_v42  ;;  %v737_v42 = vld [vmem:[%s1693_s6 + $0x78] sm:$0xff] }
  0x78   :  { %1170 = vmatprep.subr.bf16.mxu0 %v1169_v44  ;;  %v1221_v44 = vpack.c.bf16 %v737_v42, %v733_v41 }
  0x79   :  { %1204 = vmatpush3.bf16.msra.mxu1 %v1203_v51 }
  0x7a   :  { %1206 = vmatprep.subr.bf16.mxu1 %v1205_v59 }
  0x7b   :  { %1172 = vmatpush3.bf16.msra.mxu0 %v1171_v50  ;;  %v1223_v50 = vpack.c.bf16 %v736_v49, %v732_v47 }
  0x7c   :  { %1174 = vmatprep.subr.bf16.mxu0 %v1173_v55 }
  0x7d   :  { %1208 = vmatpush3.bf16.msra.mxu1 %v1207_v63  ;;  %v894_v63 = vunpack.c.l.s4 %v1287_v62 }
  0x7e   :  { %1218 = vmatprep.subr.bf16.mxu1 %v1217_v34 }
  0x7f   :  { %1176 = vmatpush3.bf16.msra.mxu0 %v1175_v60 }
  0x80   :  { %1210 = vmatprep.subr.bf16.mxu0 %v1209_v31 }
  0xf2   :  { %v150_v1 = vpop.f32.mrb[0].mxu0 }
  0xf3   :  { %v221_v2 = vpop.f32.mrb[0].mxu1  ;;  %v152_v3 = vpop.f32.mrb[1].mxu0  ;;  %v151_v16 = vadd.f32 %v150_v1, %v63_v12  ;;  %v895_v1 = vunpack.c.0.s8 %v894_v63 }
  0xf4   :  { %v223_v4 = vpop.f32.mrb[1].mxu1  ;;  %v222_v17 = vadd.f32 %v221_v2, %v71_v13  ;;  %v153_v18 = vadd.f32 %v152_v3, %v67_v14 }
  0xf5   :  { %v224_v20 = vadd.f32 %v223_v4, %v75_v15  ;;  %v898_v10 = vsub.s32 %v895_v1, %v1597_v6 }
 0x132   :  { %v1606_v19 = vpop.f32.mrb[2].mxu0 }
 0x133   :  { %v508_v21 = vmul.f32 %v1606_v19, %v151_v16  ;;  %v1609_v22 = vpop.f32.mrb[2].mxu1  ;;  %v1611_v23 = vpop.f32.mrb[3].mxu0 }
 0x134   :  { %v510_v24 = vmul.f32 %v1609_v22, %v222_v17  ;;  %v509_v25 = vmul.f32 %v1611_v23, %v153_v18  ;;  %v1615_v26 = vpop.f32.mrb[3].mxu1 }
 0x135   :  { %v511_v27 = vmul.f32 %v1615_v26, %v224_v20 }
 0x136   :  { %640 = vmatprep.mubr.f32.mxu0 %v509_v25 }
 0x137   :  { %710 = vmatprep.mubr.f32.mxu1 %v511_v27  ;;  %641 = vmatmul.mubr.f32.vlgmr.msra.gmra.mrb[4].mxu0 %v508_v21 }
 0x138   :  { %711 = vmatmul.mubr.f32.vlgmr.msra.gmra.mrb[4].mxu1 %v510_v24  ;;  %805 = vmatprep.mubr.f32.mxu0 %v1286_v0 }
 0x139   :  { %876 = vmatprep.mubr.f32.mxu1 %v1286_v0  ;;  %v722_v0 = vld [vmem:[%s1693_s6] sm:$0xff]  ;;  %1220 = vmatpush1.bf16.msra.mxu1 %v1219_v39  ;;  %s1288_s6 = smov [#allocation5]  }
 0x13a   :  { %v1211_v36 = vpack.c.bf16 %v726_v33, %v722_v0  ;;  %1222 = vmatprep.subr.bf16.mxu1 %v1221_v44  ;;  %s916_s22 = sshll.u32 %s1288_s6, 4  ;;  %s917_s22 = int_to_ptr.vmem [resolvable:$true] %s916_s22 }
 0x13b   :  { %s1257_s23 = scalar_lea.vmem %s917_s22, 128  ;;  %p1262_p9 = scmp.lt.s32.totalorder %s917_s22, %s917_s22 }
 0x13c   :  { %1212 = vmatpush1.bf16.msra.mxu0 %v1211_v36  ;;  %p1258_p8 = scmp.ne.s32.totalorder %s917_s22, %s1257_s23  ;;  %p1263_p10 = scmp.lt.s32.totalorder %s1257_s23, %s1257_s23 }
 0x13d   :  { %1214 = vmatprep.subr.bf16.mxu0 %v1213_v43  ;;  %1224 = vmatpush1.bf16.msra.mxu1 %v1223_v50 }
 0x13e   :  { %p1264_p11 = por %p1263_p10, %p1262_p9 }
 0x140   :  { %1216 = vmatpush1.bf16.msra.mxu0 %v1215_v48  ;;  %p1265_p12 = pnand %p1264_p11, %p1258_p8 }
 0x20a   :  { %v963_v51 = vpop.f32.mrb[4].mxu0 }
 0x20b   :  { %v998_v52 = vpop.f32.mrb[4].mxu1  ;;  %v964_v53 = vpop.f32.mrb[5].mxu0 }
 0x20c   :  { %v965_v54 = vadd.f32 %v964_v53, %v963_v51  ;;  %v999_v55 = vpop.f32.mrb[5].mxu1 }
 0x20d   :  { %v1000_v56 = vadd.f32 %v999_v55, %v998_v52 }
 0x20f   :  { %v713_v57 = vadd.f32 %v1000_v56, %v965_v54 }
 0x211   :  { %v928_v58 = vmul.f32 -1.442695, %v713_v57 }
 0x213   :  { %1231 = vpow2.f32 %v928_v58 }
 0x21d   :  { %v1232_v59 = vpop.eup %1231 }
 0x21e   :  { %v719_v60 = vadd.f32 1.0, %v1232_v59 }
 0x220   :  { %1233 = vrcp.f32 %v719_v60 }
 0x22a   :  { %v1234_v61 = vpop.eup %1233 }
 0x22b   :  { %929 = vmatmul.mubr.msk.f32.vlgmr.msra.gmra.mrb[6].mxu0 %vm80_vm0, %v1234_v61  ;;  %930 = vmatmul.mubr.msk.f32.vlgmr.msra.gmra.mrb[6].mxu1 %vm80_vm0, %v1234_v61 }
 0x2fe   :  { %v807_v2 = vpop.f32.mrb[6].mxu0  ;;  %v878_v3 = vpop.f32.mrb[6].mxu1 }
 0x2ff   :  { %v883_v4 = vmul.f32 %v807_v2, %v1606_v19  ;;  %v885_v5 = vmul.f32 %v878_v3, %v1609_v22  ;;  %v809_v7 = vpop.f32.mrb[7].mxu0  ;;  %v880_v8 = vpop.f32.mrb[7].mxu1 }
 0x300   :  { %v884_v9 = vmul.f32 %v809_v7, %v1611_v23  ;;  %v886_v11 = vmul.f32 %v880_v8, %v1615_v26 }
 0x302   :  { %v891_v12 = vcombine.low %v883_v4, %v884_v9  ;;  %v892_v13 = vcombine.low %v885_v5, %v886_v11 }
 0x304   :  { %v899_v14 = vrot.slane %v891_v12, %v898_v10  ;;  %v906_v15 = vrot.slane %v892_v13, %v898_v10 }
 0x306   :  { %v907_v16 = vcombine.low %v899_v14, %v906_v15 }
 0x308   :  { %909 = vst [vmem:[#allocation5] sm:$0xff] %v907_v16 }
 0x309   :  { %1268 = shalt.err (!%p1265_p12)
}
 0x30a   :  { %s1269_s1 = scalar_lea.hbm %s1694_s7, 128 }
 0x30b   :  { %p1270_p13 = scmp.ne.s32.totalorder %s1694_s7, %s1269_s1  ;;  %p1273_p0 = scmp.lt.u32.totalorder %s1269_s1, %s1694_s7 }
 0x30d   :  { %p1275_p1 = pnand %p1273_p0, %p1270_p13 }
 0x30f   :  { %1278 = shalt.err (!%p1275_p1)
}
 0x310   :  { %919 = dma.vmem_to_hbm [thread:$0]  %s917_s22, 128, %s1694_s7, [#allocation4]  }
 0x311   :  { %1281 = dma.done.wait [#allocation4], 128  }
 0x312   :  { %1282 = vsyncadd [#allocation4], 4294967168 }
 0x313   :  { %923 = vsyncpa [#allocation3], 1 }
 0x314   :  { %924 = vsyncpa [#allocation4], 1 }

</bundles_post_ra>
